<compile_context>
chip_gen: v7x
topology: tpu7x:2x2x1
jax: 0.10.0
libtpu: 0.0.40
codegen_flags: <defaults>
</compile_context>

<pallas_src>
import math
import functools

import jax
import jax.numpy as jnp
from jax import lax
from jax.experimental import pallas as pl
from jax.experimental.pallas import tpu as pltpu


def _pick_tile(dim, target, align):
    """Largest `align`-multiple divisor of `dim` that is <= target, else the
    full dimension (full extent always satisfies the (8, 128) block rule)."""
    if dim <= target:
        return dim
    t = (target // align) * align
    while t >= align:
        if dim % t == 0:
            return t
        t -= align
    return dim


# ----------------------------------------------------------------------------
# Tiled linear kernel:  out[M, N] = x[M, K] @ w_t[K, N] + b[1, N]
# ----------------------------------------------------------------------------
def _linear_kernel(x_ref, w_ref, b_ref, o_ref, acc_ref):
    kk = pl.program_id(2)

    @pl.when(kk == 0)
    def _():
        acc_ref[...] = jnp.zeros_like(acc_ref)

    acc_ref[...] += jnp.dot(x_ref[...], w_ref[...],
                            preferred_element_type=jnp.float32)

    @pl.when(kk == pl.num_programs(2) - 1)
    def _():
        o_ref[...] = (acc_ref[...] + b_ref[...].astype(jnp.float32)
                      ).astype(o_ref.dtype)


def linear(x, w_t, b):
    """x: [M, K], w_t: [K, N] (pre-transposed), b: [N] -> [M, N]."""
    M, K = x.shape
    N = w_t.shape[1]
    tm = _pick_tile(M, 256, 8)
    tn = _pick_tile(N, 256, 128)
    tk = _pick_tile(K, 512, 128)
    return pl.pallas_call(
        _linear_kernel,
        out_shape=jax.ShapeDtypeStruct((M, N), x.dtype),
        grid_spec=pltpu.PrefetchScalarGridSpec(
            num_scalar_prefetch=0,
            grid=(M // tm, N // tn, K // tk),
            in_specs=[
                pl.BlockSpec((tm, tk), lambda i, j, kk: (i, kk)),
                pl.BlockSpec((tk, tn), lambda i, j, kk: (kk, j)),
                pl.BlockSpec((1, tn), lambda i, j, kk: (0, j)),
            ],
            out_specs=pl.BlockSpec((tm, tn), lambda i, j, kk: (i, j)),
            scratch_shapes=[pltpu.VMEM((tm, tn), jnp.float32)],
        ),
        compiler_params=pltpu.CompilerParams(
            dimension_semantics=("parallel", "parallel", "arbitrary")),
    )(x, w_t, b.reshape(1, N))


# ----------------------------------------------------------------------------
# Flash attention kernel (online softmax over a KV grid axis).
# Grid: (B, num_heads, Sq // tq, Sk // tk); KV axis last ("arbitrary").
# ----------------------------------------------------------------------------
def _flash_attention_kernel(*refs, has_bias):
    if has_bias:
        q_ref, k_ref, v_ref, bias_ref, o_ref, m_ref, l_ref, acc_ref = refs
    else:
        q_ref, k_ref, v_ref, o_ref, m_ref, l_ref, acc_ref = refs
        bias_ref = None
    kv = pl.program_id(3)

    @pl.when(kv == 0)
    def _():
        m_ref[...] = jnp.full_like(m_ref, -jnp.inf)
        l_ref[...] = jnp.zeros_like(l_ref)
        acc_ref[...] = jnp.zeros_like(acc_ref)

    q = q_ref[0, 0]                      # (tq, d); softmax scale folded in Wq
    k = k_ref[0, 0]                      # (tk, d)
    # s[q, k] = sum_d q[q, d] * k[k, d]  (contract last dims, no k.T relayout)
    s = lax.dot_general(q, k, (((1,), (1,)), ((), ())),
                        preferred_element_type=jnp.float32)
    if has_bias:
        s = s + bias_ref[0, 0].astype(jnp.float32)

    m_prev = m_ref[...]
    m_new = jnp.maximum(m_prev, jnp.max(s, axis=-1, keepdims=True))
    alpha = jnp.exp(m_prev - m_new)
    p = jnp.exp(s - m_new)               # unnormalized probabilities
    l_ref[...] = alpha * l_ref[...] + jnp.sum(p, axis=-1, keepdims=True)
    acc_ref[...] = alpha * acc_ref[...] + lax.dot_general(
        p.astype(v_ref.dtype), v_ref[0, 0], (((1,), (0,)), ((), ())),
        preferred_element_type=jnp.float32)
    m_ref[...] = m_new

    @pl.when(kv == pl.num_programs(3) - 1)
    def _():
        # Deferred normalization: one reciprocal + O(tq*d) multiply.
        inv_l = pl.reciprocal(l_ref[...], approx=False)
        o_ref[0, 0] = (acc_ref[...] * inv_l).astype(o_ref.dtype)


def flash_attention(qh, kh, vh, bias=None):
    """qh: [B, nh, Sq, d]; kh/vh: [B, nh, Sk, d];
    bias: None or [B|1, nh|1, Sq, Sk]. Returns [B, nh, Sq, d]."""
    B, nh, Sq, d = qh.shape
    Sk = kh.shape[2]
    tq = _pick_tile(Sq, 256, 8)
    tk = _pick_tile(Sk, 512, 128)
    grid = (B, nh, Sq // tq, Sk // tk)

    in_specs = [
        pl.BlockSpec((1, 1, tq, d), lambda b, h, qi, ki: (b, h, qi, 0)),
        pl.BlockSpec((1, 1, tk, d), lambda b, h, qi, ki: (b, h, ki, 0)),
        pl.BlockSpec((1, 1, tk, d), lambda b, h, qi, ki: (b, h, ki, 0)),
    ]
    inputs = [qh, kh, vh]
    has_bias = bias is not None
    if has_bias:
        assert bias.ndim == 4 and bias.shape[2:] == (Sq, Sk), bias.shape
        bb = bias.shape[0] != 1     # varies with batch?
        bh = bias.shape[1] != 1     # varies with heads?
        in_specs.append(pl.BlockSpec(
            (1, 1, tq, tk),
            lambda b, h, qi, ki: (b if bb else 0, h if bh else 0, qi, ki)))
        inputs.append(bias)

    kernel = functools.partial(_flash_attention_kernel, has_bias=has_bias)
    return pl.pallas_call(
        kernel,
        out_shape=jax.ShapeDtypeStruct((B, nh, Sq, d), qh.dtype),
        grid_spec=pltpu.PrefetchScalarGridSpec(
            num_scalar_prefetch=0,
            grid=grid,
            in_specs=in_specs,
            out_specs=pl.BlockSpec((1, 1, tq, d),
                                   lambda b, h, qi, ki: (b, h, qi, 0)),
            scratch_shapes=[
                pltpu.VMEM((tq, 1), jnp.float32),   # running max m
                pltpu.VMEM((tq, 1), jnp.float32),   # running sum l
                pltpu.VMEM((tq, d), jnp.float32),   # output accumulator
            ],
        ),
        compiler_params=pltpu.CompilerParams(
            dimension_semantics=("parallel", "parallel", "parallel",
                                 "arbitrary")),
    )(*inputs)


# ----------------------------------------------------------------------------
# Parameters (PyTorch layout) + one-time repack for the kernels
# ----------------------------------------------------------------------------
def init_params(key, hidden_size, num_heads):
    att_size = hidden_size // num_heads
    inner = num_heads * att_size

    def linear_init(k, out_f, in_f):
        kw, kb = jax.random.split(k)
        bound = 1.0 / math.sqrt(in_f)
        w = jax.random.uniform(kw, (out_f, in_f), jnp.float32, -bound, bound)
        b = jax.random.uniform(kb, (out_f,), jnp.float32, -bound, bound)
        return w, b

    kq, kk, kv, ko = jax.random.split(key, 4)
    return {
        "q": linear_init(kq, inner, hidden_size),
        "k": linear_init(kk, inner, hidden_size),
        "v": linear_init(kv, inner, hidden_size),
        "o": linear_init(ko, hidden_size, inner),
    }


def prepare_params(params, hidden_size, num_heads):
    """One-time repack (off the hot path): transpose weights to [in, out],
    fold the softmax scale into the Q projection, and build a fused QKV copy
    for the self-attention fast path."""
    scale = (hidden_size // num_heads) ** (-0.5)
    wq, bq = params["q"]
    wk, bk = params["k"]
    wv, bv = params["v"]
    wo, bo = params["o"]
    wq_t, bq_s = wq.T * scale, bq * scale
    wk_t, wv_t, wo_t = wk.T, wv.T, wo.T
    return {
        "wq": wq_t, "bq": bq_s,
        "wk": wk_t, "bk": bk,
        "wv": wv_t, "bv": bv,
        "wo": wo_t, "bo": bo,
        # Fused QKV (used when q is k is v); duplicate storage is init-time
        # only and avoids per-call weight concatenation/transposes in HBM.
        "wqkv": jnp.concatenate([wq_t, wk_t, wv_t], axis=1),
        "bqkv": jnp.concatenate([bq_s, bk, bv]),
    }


def multi_head_attention(prep, q, k, v, attn_bias=None, *, num_heads):
    B, Sq, H = q.shape
    Sk = k.shape[1]
    d = H // num_heads
    inner = num_heads * d

    if (k is q) and (v is q):
        # Self-attention: one fused QKV projection call.
        qkv = linear(q.reshape(B * Sq, H), prep["wqkv"], prep["bqkv"])
        qp = qkv[:, :inner]
        kp = qkv[:, inner:2 * inner]
        vp = qkv[:, 2 * inner:]
    else:
        qp = linear(q.reshape(B * Sq, H), prep["wq"], prep["bq"])
        kp = linear(k.reshape(B * Sk, H), prep["wk"], prep["bk"])
        vp = linear(v.reshape(B * Sk, H), prep["wv"], prep["bv"])

    # [B, S, nh, d] -> [B, nh, S, d]. Kept as XLA transposes: a per-head
    # column-slab BlockSpec is only lane-legal when d % 128 == 0.
    qh = qp.reshape(B, Sq, num_heads, d).transpose(0, 2, 1, 3)
    kh = kp.reshape(B, Sk, num_heads, d).transpose(0, 2, 1, 3)
    vh = vp.reshape(B, Sk, num_heads, d).transpose(0, 2, 1, 3)

    if attn_bias is not None:
        attn_bias = attn_bias.astype(jnp.float32)

    ctx = flash_attention(qh, kh, vh, attn_bias)        # [B, nh, Sq, d]
    ctx = ctx.transpose(0, 2, 1, 3).reshape(B * Sq, inner)
    return linear(ctx, prep["wo"], prep["bo"]).reshape(B, Sq, H)


# ----------------------------------------------------------------------------
# Reference (pure JAX, PyTorch semantics) for sanity check
# ----------------------------------------------------------------------------
def reference(params, q, k, v, attn_bias, *, num_heads):
    B, Sq, H = q.shape
    Sk = k.shape[1]
    d = H // num_heads
    scale = d ** (-0.5)

    def lin(x, wb):
        w, b = wb
        return x @ w.T + b

    qp = lin(q, params["q"]).reshape(B, Sq, num_heads, d).transpose(0, 2, 1, 3)
    kp = lin(k, params["k"]).reshape(B, Sk, num_heads, d).transpose(0, 2, 1, 3)
    vp = lin(v, params["v"]).reshape(B, Sk, num_heads, d).transpose(0, 2, 1, 3)
    s = jnp.einsum("bhqd,bhkd->bhqk", qp * scale, kp)
    if attn_bias is not None:
        s = s + attn_bias
    p = jax.nn.softmax(s, axis=-1)
    ctx = jnp.einsum("bhqk,bhkd->bhqd", p, vp)
    ctx = ctx.transpose(0, 2, 1, 3).reshape(B, Sq, num_heads * d)
    return lin(ctx, params["o"]).reshape(B, Sq, H)


if __name__ == "__main__":
    B, H, NH = 2, 32, 4
    Sq, Sk = 8, 16
    key = jax.random.PRNGKey(0)
    kp, kq_, kk_, kv_, kb = jax.random.split(key, 5)

    params = init_params(kp, H, NH)
    prep = prepare_params(params, H, NH)

    # Cross-attention (Sq != Sk) with a bias broadcast over batch.
    q = jax.random.normal(kq_, (B, Sq, H), jnp.float32)
    k = jax.random.normal(kk_, (B, Sk, H), jnp.float32)
    v = jax.random.normal(kv_, (B, Sk, H), jnp.float32)
    attn_bias = jax.random.normal(kb, (1, NH, Sq, Sk), jnp.float32) * 0.1

    out = multi_head_attention(prep, q, k, v, attn_bias, num_heads=NH)
    out = jax.block_until_ready(out)
    ref = reference(params, q, k, v, attn_bias, num_heads=NH)
    assert out.shape == (B, Sq, H)
    assert jnp.allclose(out, ref, atol=1e-4, rtol=1e-4), \
        float(jnp.abs(out - ref).max())

    # Self-attention (fused QKV path), no bias -> no zero-bias DMA.
    out2 = multi_head_attention(prep, q, q, q, None, num_heads=NH)
    out2 = jax.block_until_ready(out2)
    ref2 = reference(params, q, q, q, None, num_heads=NH)
    assert jnp.allclose(out2, ref2, atol=1e-4, rtol=1e-4), \
        float(jnp.abs(out2 - ref2).max())

    print("KERNEL_OK")
</pallas_src>

<mosaic_0001>
module attributes {stable_mosaic.version = 11 : i64} {
  func.func @_linear_kernel(%arg0: i32, %arg1: i32, %arg2: i32, %arg3: memref<16x32xf32, #tpu.memory_space<vmem>>, %arg4: memref<32x32xf32, #tpu.memory_space<vmem>>, %arg5: memref<1x32xf32, #tpu.memory_space<vmem>>, %arg6: memref<16x32xf32, #tpu.memory_space<vmem>>, %arg7: memref<16x32xf32, #tpu.memory_space<vmem>>) attributes {dimension_semantics = [#tpu.dimension_semantics<parallel>, #tpu.dimension_semantics<parallel>, #tpu.dimension_semantics<arbitrary>], iteration_bounds = array<i64: 1, 1, 1>, scalar_prefetch = 0 : i64, scratch_operands = 1 : i64, tpu.core_type = #tpu.core_type<tc>, window_params = [{transform_indices = @transform_0, window_bounds = array<i64: 16, 32>}, {transform_indices = @transform_1, window_bounds = array<i64: 32, 32>}, {transform_indices = @transform_2, window_bounds = array<i64: 1, 32>}, {transform_indices = @transform_3, window_bounds = array<i64: 16, 32>}]} {
    %c0_i32 = arith.constant 0 : i32
    %0 = arith.cmpi eq, %arg2, %c0_i32 : i32
    %1 = arith.extui %0 : i1 to i32
    %c0_i32_0 = arith.constant 0 : i32
    %2 = arith.cmpi ne, %1, %c0_i32_0 : i32
    scf.if %2 {
      %cst_10 = arith.constant 0.000000e+00 : f32
      %12 = vector.broadcast %cst_10 : f32 to vector<16x32xf32>
      %c0_11 = arith.constant 0 : index
      %c0_12 = arith.constant 0 : index
      %13 = vector.load %arg7[%c0_11, %c0_12] : memref<16x32xf32, #tpu.memory_space<vmem>>, vector<16x32xf32>
      tpu.vector_store %arg7[%c0_11, %c0_12], %12 {strides = array<i32>} : memref<16x32xf32, #tpu.memory_space<vmem>>, vector<16x32xf32>,
    } else {
    }
    %c0 = arith.constant 0 : index
    %c0_1 = arith.constant 0 : index
    %3 = vector.load %arg7[%c0, %c0_1] : memref<16x32xf32, #tpu.memory_space<vmem>>, vector<16x32xf32>
    %c0_2 = arith.constant 0 : index
    %c0_3 = arith.constant 0 : index
    %4 = vector.load %arg3[%c0_2, %c0_3] : memref<16x32xf32, #tpu.memory_space<vmem>>, vector<16x32xf32>
    %c0_4 = arith.constant 0 : index
    %c0_5 = arith.constant 0 : index
    %5 = vector.load %arg4[%c0_4, %c0_5] : memref<32x32xf32, #tpu.memory_space<vmem>>, vector<32x32xf32>
    %cst = arith.constant dense<0.000000e+00> : vector<16x32xf32>
    %6 = tpu.matmul %4, %5, %cst {dimension_numbers = #tpu.dot_dimension_numbers<[1], [0], [0], [1], [0, 0, 1, 1], [], []>} : vector<16x32xf32>, vector<32x32xf32>, vector<16x32xf32> -> vector<16x32xf32>
    %7 = arith.addf %3, %6 : vector<16x32xf32>
    %c0_6 = arith.constant 0 : index
    %c0_7 = arith.constant 0 : index
    %8 = vector.load %arg7[%c0_6, %c0_7] : memref<16x32xf32, #tpu.memory_space<vmem>>, vector<16x32xf32>
    tpu.vector_store %arg7[%c0_6, %c0_7], %7 {strides = array<i32>} : memref<16x32xf32, #tpu.memory_space<vmem>>, vector<16x32xf32>,
    %c0_i32_8 = arith.constant 0 : i32
    %9 = arith.cmpi eq, %arg2, %c0_i32_8 : i32
    %10 = arith.extui %9 : i1 to i32
    %c0_i32_9 = arith.constant 0 : i32
    %11 = arith.cmpi ne, %10, %c0_i32_9 : i32
    scf.if %11 {
      %c0_10 = arith.constant 0 : index
      %c0_11 = arith.constant 0 : index
      %12 = vector.load %arg7[%c0_10, %c0_11] : memref<16x32xf32, #tpu.memory_space<vmem>>, vector<16x32xf32>
      %c0_12 = arith.constant 0 : index
      %c0_13 = arith.constant 0 : index
      %13 = vector.load %arg5[%c0_12, %c0_13] : memref<1x32xf32, #tpu.memory_space<vmem>>, vector<1x32xf32>
      %14 = vector.broadcast %13 : vector<1x32xf32> to vector<16x32xf32>
      %15 = arith.addf %12, %14 : vector<16x32xf32>
      %c0_14 = arith.constant 0 : index
      %c0_15 = arith.constant 0 : index
      %16 = vector.load %arg6[%c0_14, %c0_15] : memref<16x32xf32, #tpu.memory_space<vmem>>, vector<16x32xf32>
      tpu.vector_store %arg6[%c0_14, %c0_15], %15 {strides = array<i32>} : memref<16x32xf32, #tpu.memory_space<vmem>>, vector<16x32xf32>,
    } else {
    }
    return
  }
  func.func @transform_0(%arg0: i32, %arg1: i32, %arg2: i32) -> (i32, i32) {
    %c0_i32 = arith.constant 0 : i32
    return %arg0, %arg2 : i32, i32
  }
  func.func @transform_1(%arg0: i32, %arg1: i32, %arg2: i32) -> (i32, i32) {
    %c0_i32 = arith.constant 0 : i32
    return %arg2, %arg1 : i32, i32
  }
  func.func @transform_2(%arg0: i32, %arg1: i32, %arg2: i32) -> (i32, i32) {
    %c0_i32 = arith.constant 0 : i32
    %c0_i32_0 = arith.constant 0 : i32
    return %c0_i32, %arg1 : i32, i32
  }
  func.func @transform_3(%arg0: i32, %arg1: i32, %arg2: i32) -> (i32, i32) {
    %c0_i32 = arith.constant 0 : i32
    return %arg0, %arg1 : i32, i32
  }
}

</mosaic_0001>

<bundles_post_ra>
// kernel: tpu_custom_call.1
= control target key start
LH: loop header
LB: loop body
LE: loop exit
PB: predicated region body
PF: predicated region fallthrough
CT: control target
= control target key end

     0   :  { %8 = vsyncpa [#allocation4], 0  ;;  %s366_s0 = inlined_call_operand.hbm [shape: f32[16,32], index: 0, kind: input, shape index: {}]   ;;  %s367_s1 = inlined_call_operand.hbm [shape: f32[32,32], index: 1, kind: input, shape index: {}]   ;;  %s368_s2 = inlined_call_operand.vmem [shape: f32[1,32], index: 2, kind: input, shape index: {}]   ;;  %s369_s3 = inlined_call_operand.hbm [shape: f32[16,32], index: 3, kind: output, shape index: {}]  }
   0x1   :  { %9 = vsyncpa [#allocation7], 0 }
   0x2   :  { %10 = vsyncpa [#allocation5], 0  ;;  %s284_s12 = smov [#allocation3]   ;;  %s212_s16 = scalar_lea.hbm %s366_s0, 256 }
   0x3   :  { %s16_s13 = sshll.u32 %s284_s12, 4  ;;  %p213_p0 = scmp.ne.s32.totalorder %s366_s0, %s212_s16  ;;  %s17_s13 = int_to_ptr.vmem [resolvable:$true] %s16_s13 }
   0x4   :  { %p216_p1 = scmp.lt.u32.totalorder %s212_s16, %s366_s0 }
   0x6   :  { %p218_p2 = pnand %p216_p1, %p213_p0 }
   0x8   :  { %221 = shalt.err (!%p218_p2)
}
   0x9   :  { %s222_s21 = scalar_lea.vmem %s17_s13, 256  ;;  %p227_p4 = scmp.lt.s32.totalorder %s17_s13, %s17_s13 }
   0xa   :  { %p223_p3 = scmp.ne.s32.totalorder %s17_s13, %s222_s21  ;;  %p228_p5 = scmp.lt.s32.totalorder %s222_s21, %s222_s21 }
   0xc   :  { %p229_p6 = por %p228_p5, %p227_p4 }
   0xe   :  { %p230_p7 = pnand %p229_p6, %p223_p3 }
  0x10   :  { %233 = shalt.err (!%p230_p7)
}
  0x11   :  { %s285_s22 = smov 128   ;;  %s286_s23 = smov 8  }
  0x12   :  { %22 = dma.hbm_to_vmem [thread:$0]  %s366_s0, 256, %s17_s13, [#allocation4], %s285_s22, %s285_s22, %s286_s23  }
  0x13   :  { %s287_s26 = smov [#allocation6]   ;;  %s234_s30 = scalar_lea.hbm %s367_s1, 512 }
  0x14   :  { %s28_s27 = sshll.u32 %s287_s26, 4  ;;  %p235_p8 = scmp.ne.s32.totalorder %s367_s1, %s234_s30  ;;  %s29_s27 = int_to_ptr.vmem [resolvable:$true] %s28_s27 }
  0x15   :  { %p238_p9 = scmp.lt.u32.totalorder %s234_s30, %s367_s1 }
  0x17   :  { %p240_p10 = pnand %p238_p9, %p235_p8 }
  0x19   :  { %243 = shalt.err (!%p240_p10)
}
  0x1a   :  { %s244_s8 = scalar_lea.vmem %s29_s27, 512  ;;  %p249_p12 = scmp.lt.s32.totalorder %s29_s27, %s29_s27 }
  0x1b   :  { %p245_p11 = scmp.ne.s32.totalorder %s29_s27, %s244_s8  ;;  %p250_p13 = scmp.lt.s32.totalorder %s244_s8, %s244_s8 }
  0x1d   :  { %p251_p0 = por %p250_p13, %p249_p12 }
  0x1f   :  { %p252_p1 = pnand %p251_p0, %p245_p11 }
  0x21   :  { %255 = shalt.err (!%p252_p1)
}
  0x22   :  { %34 = dma.hbm_to_vmem [thread:$0]  %s367_s1, 512, %s29_s27, [#allocation7], %s285_s22, %s285_s22, %s286_s23  }
  0x23   :  { %278 = dma.done.wait [#allocation4], 256  }
  0x24   :  { %279 = vsyncadd [#allocation4], 4294967040 }
  0x25   :  { %280 = dma.done.wait [#allocation7], 512  }
  0x26   :  { %281 = vsyncadd [#allocation7], 4294966784  ;;  %vm47_vm0 = vcmask 261120   ;;  %v288_v0 = vmov 0.0   ;;  %v54_v1 = vld [vmem:[#allocation6] sm:$0xff]  ;;  %v55_v2 = vld [vmem:[#allocation6 + $0x8] sm:$0xff] }
  0x27   :  { %49 = vst.msk [vmem:[#allocation2 + $0x8] sm:$0xff] %vm47_vm0, %v288_v0  ;;  %48 = vst.msk [vmem:[#allocation2] sm:$0xff] %vm47_vm0, %v288_v0  ;;  %v56_v3 = vld [vmem:[#allocation6 + $0x10] sm:$0xff]  ;;  %v198_v4 = vpack.c.bf16 %v55_v2, %v54_v1  ;;  %v57_v5 = vld [vmem:[#allocation6 + $0x18] sm:$0xff]  ;;  %s289_s11 = smov [#allocation8]  }
  0x28   :  { %v52_v6 = vld [vmem:[#allocation3] sm:$0xff]  ;;  %v202_v7 = vpack.c.bf16 %v57_v5, %v56_v3  ;;  %v53_v8 = vld [vmem:[#allocation3 + $0x8] sm:$0xff]  ;;  %v180_v15 = vld [vmem:[%s368_s2] ss:$0 sm:$0xff]  ;;  %s165_s12 = sshll.u32 %s289_s11, 4  ;;  %s166_s12 = int_to_ptr.vmem [resolvable:$true] %s165_s12 }
  0x29   :  { %195 = vmatprep.mubr.msk.f32.mxu0 %vm47_vm0, %v52_v6  ;;  %199 = vmatprep.subr.bf16.mxu0 %v198_v4  ;;  %s256_s13 = scalar_lea.vmem %s166_s12, 256  ;;  %p261_p3 = scmp.lt.s32.totalorder %s166_s12, %s166_s12 }
  0x2a   :  { %201 = vmatpush3.bf16.msra.mxu0 %v198_v4  ;;  %p257_p2 = scmp.ne.s32.totalorder %s166_s12, %s256_s13  ;;  %p262_p4 = scmp.lt.s32.totalorder %s256_s13, %s256_s13 }
  0x2b   :  { %203 = vmatprep.subr.bf16.mxu0 %v202_v7 }
  0x2c   :  { %p263_p5 = por %p262_p4, %p261_p3 }
  0x2e   :  { %205 = vmatpush3.bf16.msra.mxu0 %v202_v7  ;;  %v51_v9 = vld [vmem:[#allocation2 + $0x8] sm:$0xff]  ;;  %v50_v10 = vld [vmem:[#allocation2] sm:$0xff]  ;;  %p264_p6 = pnand %p263_p5, %p257_p2 }
  0x31   :  { %196 = vmatmul.mubr.msk.f32.vlgmr.msra.gmra.mrb[0].mxu0 %vm47_vm0, %v53_v8 }
 0x104   :  { %v197_v11 = vpop.f32.mrb[0].mxu0 }
 0x105   :  { %v141_v12 = vadd.f32 %v197_v11, %v51_v9  ;;  %v131_v13 = vpop.f32.mrb[1].mxu0 }
 0x106   :  { %v140_v14 = vadd.f32 %v131_v13, %v50_v10 }
 0x107   :  { %143 = vst.msk [vmem:[#allocation2 + $0x8] sm:$0xff] %vm47_vm0, %v141_v12 }
 0x108   :  { %142 = vst.msk [vmem:[#allocation2] sm:$0xff] %vm47_vm0, %v140_v14 }
 0x10e   :  { %v148_v16 = vld [vmem:[#allocation2 + $0x8] sm:$0xff] }
 0x10f   :  { %v147_v17 = vld [vmem:[#allocation2] sm:$0xff]  ;;  %v157_v18 = vadd.f32 %v180_v15, %v148_v16 }
 0x110   :  { %v156_v19 = vadd.f32 %v180_v15, %v147_v17 }
 0x111   :  { %159 = vst.msk [vmem:[#allocation8 + $0x8] sm:$0xff] %vm47_vm0, %v157_v18 }
 0x112   :  { %158 = vst.msk [vmem:[#allocation8] sm:$0xff] %vm47_vm0, %v156_v19 }
 0x113   :  { %267 = shalt.err (!%p264_p6)
}
 0x114   :  { %s268_s15 = scalar_lea.hbm %s369_s3, 256 }
 0x115   :  { %p269_p7 = scmp.ne.s32.totalorder %s369_s3, %s268_s15  ;;  %p272_p8 = scmp.lt.u32.totalorder %s268_s15, %s369_s3 }
 0x117   :  { %p274_p9 = pnand %p272_p8, %p269_p7 }
 0x119   :  { %277 = shalt.err (!%p274_p9)
}
 0x11a   :  { %171 = dma.vmem_to_hbm [thread:$0]  %s166_s12, 256, %s369_s3, [#allocation5], %s285_s22, %s285_s22, %s286_s23  }
 0x11b   :  { %282 = dma.done.wait [#allocation5], 256  }
 0x11c   :  { %283 = vsyncadd [#allocation5], 4294967040 }
 0x11d   :  { %175 = vsyncpa [#allocation4], 1 }
 0x11e   :  { %176 = vsyncpa [#allocation7], 1 }
 0x11f   :  { %177 = vsyncpa [#allocation5], 1 }

</bundles_post_ra>
